<compile_context>
chip_gen: v5e
topology: v5e:2x2
jax: 0.10.0
libtpu: 0.0.40
codegen_flags: <defaults>
</compile_context>

<pallas_src>
import functools

import jax
import jax.numpy as jnp
from jax import lax
from jax.experimental import pallas as pl
from jax.experimental.pallas import tpu as pltpu


def _round_up(a, b):
    return pl.cdiv(a, b) * b


# ----------------------------- Pallas kernels ------------------------------

def _conv_relu_stats_kernel(p_ref, w_ref, b_ref, y_ref, sum_ref, sq_ref, *,
                            tile_s, ohw, ohw_pad, apply_relu):
    """Channel-major fused conv GEMM + bias + (ReLU) + per-tile BN partials.

    Blocks:
      p_ref  : (1, K, tile_s)        bf16  im2col patches (one image slab)
      w_ref  : (tile_oc, K)          bf16  conv weights (resident when small)
      b_ref  : (tile_oc, 1)          f32   conv bias
      y_ref  : (1, tile_oc, tile_s)  bf16  conv(+ReLU) output, channel-major
      sum/sq : (1, tile_oc, 1)       f32   per-tile BN partial sums
    """
    y = jnp.dot(w_ref[...], p_ref[0], preferred_element_type=jnp.float32)
    y = y + b_ref[...]
    if apply_relu:
        y = jnp.maximum(y, 0.0)

    y16 = y.astype(y_ref.dtype)
    y_ref[0] = y16

    # Statistics are taken on the exact values pass 2 reads back (bf16
    # quantized), accumulated in f32.
    yf = y16.astype(jnp.float32)
    sum_ref[0] = jnp.sum(yf, axis=1, keepdims=True)
    sq_ref[0] = jnp.sum(yf * yf, axis=1, keepdims=True)

    if ohw_pad != ohw:
        # Only the last spatial tile of each image carries padded columns;
        # re-emit masked sums there (cold path, skipped everywhere else).
        s = pl.program_id(1)

        @pl.when(s == pl.num_programs(1) - 1)
        def _():
            col = lax.broadcasted_iota(jnp.int32, yf.shape, 1)
            valid = col < (ohw - s * tile_s)
            ym = jnp.where(valid, yf, 0.0)
            sum_ref[0] = jnp.sum(ym, axis=1, keepdims=True)
            sq_ref[0] = jnp.sum(ym * ym, axis=1, keepdims=True)


def _bn_apply_kernel(y_ref, scale_ref, shift_ref, o_ref):
    """out = y * scale + shift; already channel-major -> no final transpose."""
    y = y_ref[0].astype(jnp.float32)
    o_ref[0] = (y * scale_ref[...] + shift_ref[...]).astype(o_ref.dtype)


# ------------------------------ host wrapper -------------------------------

def _im2col_cm(x, kh, kw, stride, padding):
    """x: (N, C, H, W) -> patches (N, C*KH*KW, OH*OW); K order (C, KH, KW)
    matches weight.reshape(OC, C*KH*KW)."""
    n, c, h, w = x.shape
    oh = (h + 2 * padding - kh) // stride + 1
    ow = (w + 2 * padding - kw) // stride + 1
    xp = jnp.pad(x, ((0, 0), (0, 0), (padding, padding), (padding, padding)))
    taps = []
    for i in range(kh):
        for j in range(kw):
            taps.append(xp[:, :, i:i + (oh - 1) * stride + 1:stride,
                               j:j + (ow - 1) * stride + 1:stride])
    cols = jnp.stack(taps, axis=2)                    # (N, C, KH*KW, OH, OW)
    return cols.reshape(n, c * kh * kw, oh * ow), oh, ow


@functools.partial(jax.jit,
                   static_argnames=("stride", "padding", "activation", "eps"))
def conv2drb_forward(x, weight, bias, gamma, beta, *, stride=1, padding=0,
                     activation=True, eps=1e-5):
    """x: (N, C_in, H, W) f32 NCHW. Returns (N, C_out, OH, OW) f32."""
    batch, _, _, _ = x.shape
    oc, _, kh, kw = weight.shape

    patches, oh, ow = _im2col_cm(x, kh, kw, stride, padding)    # (N, K, OHW) f32
    _, k, ohw = patches.shape

    # --- channel (OC) tiling: lane-padded; weights resident when they fit ---
    oc_pad = _round_up(oc, 128)
    if k * oc_pad * 2 <= (8 << 20):
        tile_oc = oc_pad          # whole (OC_pad, K) slab DMA'd once, resident
    elif oc_pad % 256 == 0:
        tile_oc = 256             # fill the 256-wide MXU on v6e / v7x
    else:
        tile_oc = 128
    num_j = oc_pad // tile_oc

    # --- spatial (M) tiling: biggest tile under an explicit VMEM budget ---
    def fp1(ts):   # conservative double-buffered pass-1 footprint (bytes)
        return (2 * (2 * k * ts + 2 * tile_oc * ts + 8 * tile_oc)
                + 2 * (2 * tile_oc * k + 4 * tile_oc))

    tile_s = min(512, _round_up(ohw, 128))
    while tile_s > 128 and fp1(tile_s) > (20 << 20):
        tile_s -= 128
    ohw_pad = _round_up(ohw, tile_s)
    num_s = ohw_pad // tile_s

    # bf16 MXU operands (accumulation stays f32 inside the kernel).
    patches = jnp.pad(patches, ((0, 0), (0, 0), (0, ohw_pad - ohw)))
    patches = patches.astype(jnp.bfloat16)
    w_mat = jnp.pad(weight.reshape(oc, k),
                    ((0, oc_pad - oc), (0, 0))).astype(jnp.bfloat16)
    b_col = jnp.pad(bias.astype(jnp.float32), (0, oc_pad - oc)).reshape(oc_pad, 1)
    g_col = jnp.pad(gamma.astype(jnp.float32), (0, oc_pad - oc)).reshape(oc_pad, 1)
    be_col = jnp.pad(beta.astype(jnp.float32), (0, oc_pad - oc)).reshape(oc_pad, 1)

    if tile_oc == oc_pad:
        w_index = lambda b, s, j: (0, 0)      # constant -> fetched once
    else:
        w_index = lambda b, s, j: (j, 0)

    kernel1 = functools.partial(_conv_relu_stats_kernel, tile_s=tile_s,
                                ohw=ohw, ohw_pad=ohw_pad, apply_relu=activation)

    # --- Pass 1: conv GEMM + bias + ReLU + per-tile BN partial statistics ---
    y_cm, sum_part, sq_part = pl.pallas_call(
        kernel1,
        out_shape=(
            jax.ShapeDtypeStruct((batch, oc_pad, ohw_pad), jnp.bfloat16),
            jax.ShapeDtypeStruct((batch * num_s, oc_pad, 1), jnp.float32),
            jax.ShapeDtypeStruct((batch * num_s, oc_pad, 1), jnp.float32),
        ),
        grid=(batch, num_s, num_j),
        in_specs=[
            pl.BlockSpec((1, k, tile_s), lambda b, s, j: (b, 0, s)),
            pl.BlockSpec((tile_oc, k), w_index),
            pl.BlockSpec((tile_oc, 1), lambda b, s, j: (j, 0)),
        ],
        out_specs=(
            pl.BlockSpec((1, tile_oc, tile_s), lambda b, s, j: (b, j, s)),
            pl.BlockSpec((1, tile_oc, 1), lambda b, s, j: (b * num_s + s, j, 0)),
            pl.BlockSpec((1, tile_oc, 1), lambda b, s, j: (b * num_s + s, j, 0)),
        ),
        compiler_params=pltpu.CompilerParams(
            dimension_semantics=("parallel", "parallel", "parallel"),
            vmem_limit_bytes=int(min(max(fp1(tile_s) + (8 << 20), 32 << 20),
                                     64 << 20))),
    )(patches, w_mat, b_col)

    # --- tiny per-channel finalize in JAX: fold BN into scale/shift once ---
    count = float(batch * ohw)
    ch_sum = jnp.sum(sum_part, axis=0)                 # (oc_pad, 1)
    ch_sq = jnp.sum(sq_part, axis=0)
    mean = ch_sum / count
    var = jnp.maximum(ch_sq / count - mean * mean, 0.0)   # biased var (PyTorch fwd)
    # TODO(synk): single-pass E[y^2]-E[y]^2 can lose precision for very large
    # M / large-magnitude activations; switch to a shifted two-pass combine
    # if that regime matters.
    scale = g_col * lax.rsqrt(var + eps)
    shift = be_col - mean * scale

    # --- Pass 2: BN apply (mem-bound), wide lane-dense channel-major blocks ---
    tile_oc2 = oc_pad
    tile_s2 = tile_s
    for cand in (8 * tile_s, 4 * tile_s, 2 * tile_s, tile_s):
        if ohw_pad % cand == 0 and 12 * cand * tile_oc2 <= (16 << 20):
            tile_s2 = cand
            break
    if 12 * tile_s2 * tile_oc2 > (16 << 20):
        tile_oc2 = tile_oc

    out_cm = pl.pallas_call(
        _bn_apply_kernel,
        out_shape=jax.ShapeDtypeStruct((batch, oc_pad, ohw_pad), jnp.float32),
        grid=(batch, oc_pad // tile_oc2, ohw_pad // tile_s2),
        in_specs=[
            pl.BlockSpec((1, tile_oc2, tile_s2), lambda b, j, s: (b, j, s)),
            pl.BlockSpec((tile_oc2, 1), lambda b, j, s: (j, 0)),
            pl.BlockSpec((tile_oc2, 1), lambda b, j, s: (j, 0)),
        ],
        out_specs=pl.BlockSpec((1, tile_oc2, tile_s2), lambda b, j, s: (b, j, s)),
        compiler_params=pltpu.CompilerParams(
            dimension_semantics=("parallel", "parallel", "parallel")),
    )(y_cm, scale, shift)

    # Channel-major output -> NCHW is just a slice + free reshape (no transpose
    # pass; the slice is a no-op when oc/ohw are already padded-aligned).
    return out_cm[:, :oc, :ohw].reshape(batch, oc, oh, ow)


# ------------------------------- reference ---------------------------------

def _reference(x, weight, bias, gamma, beta, *, stride, padding,
               activation=True, eps=1e-5):
    y = lax.conv_general_dilated(
        x, weight, window_strides=(stride, stride),
        padding=[(padding, padding), (padding, padding)],
        dimension_numbers=("NCHW", "OIHW", "NCHW"),
        precision=lax.Precision.HIGHEST)
    y = y + bias.reshape(1, -1, 1, 1)
    if activation:
        y = jnp.maximum(y, 0.0)                 # ReLU BEFORE BN (module order)
    mean = jnp.mean(y, axis=(0, 2, 3), keepdims=True)
    var = jnp.mean((y - mean) ** 2, axis=(0, 2, 3), keepdims=True)
    y = (y - mean) * lax.rsqrt(var + eps)
    return y * gamma.reshape(1, -1, 1, 1) + beta.reshape(1, -1, 1, 1)


# --------------------------------- main -------------------------------------

if __name__ == "__main__":
    key = jax.random.PRNGKey(0)
    k_x, k_w, k_b = jax.random.split(key, 3)

    N, C_IN, H, W = 2, 4, 16, 16
    C_OUT, KH, KW = 8, 3, 3
    STRIDE, PADDING = 1, 1

    x = jax.random.normal(k_x, (N, C_IN, H, W), dtype=jnp.float32)
    weight = jax.random.normal(k_w, (C_OUT, C_IN, KH, KW), dtype=jnp.float32) * 0.1
    bias = jax.random.normal(k_b, (C_OUT,), dtype=jnp.float32) * 0.01
    gamma = jnp.ones((C_OUT,), dtype=jnp.float32)   # BatchNorm2d default weight
    beta = jnp.zeros((C_OUT,), dtype=jnp.float32)   # BatchNorm2d default bias

    out = conv2drb_forward(x, weight, bias, gamma, beta,
                           stride=STRIDE, padding=PADDING, activation=True)
    out = jax.block_until_ready(out)
    assert out.shape == (N, C_OUT, H, W)

    # Tight check: reference on bf16-rounded GEMM operands isolates kernel /
    # fusion correctness from bf16 input quantization; the bf16 y intermediate
    # adds ~2^-9 relative noise, hence 2e-2 tolerance.
    xq = x.astype(jnp.bfloat16).astype(jnp.float32)
    wq = weight.astype(jnp.bfloat16).astype(jnp.float32)
    ref_q = _reference(xq, wq, bias, gamma, beta,
                       stride=STRIDE, padding=PADDING, activation=True)
    assert jnp.allclose(out, ref_q, rtol=2e-2, atol=2e-2), \
        "mismatch vs bf16-operand reference"

    # Loose check against the full-f32 reference.
    ref = _reference(x, weight, bias, gamma, beta,
                     stride=STRIDE, padding=PADDING, activation=True)
    assert jnp.allclose(out, ref, rtol=5e-2, atol=5e-2), \
        "mismatch vs f32 reference"

    print("KERNEL_OK")
</pallas_src>

<mosaic_0001>
module attributes {stable_mosaic.version = 11 : i64} {
  func.func @_conv_relu_stats_kernel(%arg0: i32, %arg1: i32, %arg2: i32, %arg3: memref<1x36x256xbf16, #tpu.memory_space<vmem>>, %arg4: memref<128x36xbf16, #tpu.memory_space<vmem>>, %arg5: memref<128x1xf32, #tpu.memory_space<vmem>>, %arg6: memref<1x128x256xbf16, #tpu.memory_space<vmem>>, %arg7: memref<1x128x1xf32, #tpu.memory_space<vmem>>, %arg8: memref<1x128x1xf32, #tpu.memory_space<vmem>>) attributes {dimension_semantics = [#tpu.dimension_semantics<parallel>, #tpu.dimension_semantics<parallel>, #tpu.dimension_semantics<parallel>], iteration_bounds = array<i64: 2, 1, 1>, scalar_prefetch = 0 : i64, scratch_operands = 0 : i64, tpu.core_type = #tpu.core_type<tc>, window_params = [{transform_indices = @transform_0, window_bounds = array<i64: 1, 36, 256>}, {pipeline_mode = #tpu.pipeline_mode<synchronous>, transform_indices = @transform_1, window_bounds = array<i64: 128, 36>}, {transform_indices = @transform_2, window_bounds = array<i64: 128, 1>}, {transform_indices = @transform_3, window_bounds = array<i64: 1, 128, 256>}, {transform_indices = @transform_4, window_bounds = array<i64: 1, 128, 1>}, {transform_indices = @transform_5, window_bounds = array<i64: 1, 128, 1>}]} {
    %c0 = arith.constant 0 : index
    %c0_0 = arith.constant 0 : index
    %0 = vector.load %arg4[%c0, %c0_0] : memref<128x36xbf16, #tpu.memory_space<vmem>>, vector<128x36xbf16>
    %c0_1 = arith.constant 0 : index
    %c0_2 = arith.constant 0 : index
    %c0_3 = arith.constant 0 : index
    %1 = vector.load %arg3[%c0_1, %c0_2, %c0_3] : memref<1x36x256xbf16, #tpu.memory_space<vmem>>, vector<1x36x256xbf16>
    %2 = vector.shape_cast %1 : vector<1x36x256xbf16> to vector<36x256xbf16>
    %cst = arith.constant dense<0.000000e+00> : vector<128x256xf32>
    %3 = tpu.matmul %0, %2, %cst {dimension_numbers = #tpu.dot_dimension_numbers<[1], [0], [0], [1], [0, 0, 1, 1], [], []>} : vector<128x36xbf16>, vector<36x256xbf16>, vector<128x256xf32> -> vector<128x256xf32>
    %c0_4 = arith.constant 0 : index
    %c0_5 = arith.constant 0 : index
    %4 = vector.load %arg5[%c0_4, %c0_5] : memref<128x1xf32, #tpu.memory_space<vmem>>, vector<128x1xf32>
    %5 = vector.broadcast %4 : vector<128x1xf32> to vector<128x256xf32>
    %6 = arith.addf %3, %5 : vector<128x256xf32>
    %cst_6 = arith.constant 0.000000e+00 : f32
    %7 = vector.broadcast %cst_6 : f32 to vector<128x256xf32>
    %8 = arith.maximumf %6, %7 : vector<128x256xf32>
    %9 = arith.truncf %8 : vector<128x256xf32> to vector<128x256xbf16>
    %c0_7 = arith.constant 0 : index
    %c0_8 = arith.constant 0 : index
    %c0_9 = arith.constant 0 : index
    %10 = vector.load %arg6[%c0_7, %c0_8, %c0_9] : memref<1x128x256xbf16, #tpu.memory_space<vmem>>, vector<1x128x256xbf16>
    %11 = vector.shape_cast %10 : vector<1x128x256xbf16> to vector<128x256xbf16>
    %12 = vector.shape_cast %9 : vector<128x256xbf16> to vector<1x128x256xbf16>
    tpu.vector_store %arg6[%c0_7, %c0_8, %c0_9], %12 {strides = array<i32>} : memref<1x128x256xbf16, #tpu.memory_space<vmem>>, vector<1x128x256xbf16>,
    %13 = arith.extf %9 : vector<128x256xbf16> to vector<128x256xf32>
    %cst_10 = arith.constant dense<0.000000e+00> : vector<128xf32>
    %14 = vector.multi_reduction <add>, %13, %cst_10 [1] : vector<128x256xf32> to vector<128xf32>
    %15 = vector.shape_cast %14 : vector<128xf32> to vector<128x1xf32>
    %c0_11 = arith.constant 0 : index
    %c0_12 = arith.constant 0 : index
    %c0_13 = arith.constant 0 : index
    %16 = vector.load %arg7[%c0_11, %c0_12, %c0_13] : memref<1x128x1xf32, #tpu.memory_space<vmem>>, vector<1x128x1xf32>
    %17 = vector.shape_cast %16 : vector<1x128x1xf32> to vector<128x1xf32>
    %18 = vector.shape_cast %15 : vector<128x1xf32> to vector<1x128x1xf32>
    tpu.vector_store %arg7[%c0_11, %c0_12, %c0_13], %18 {strides = array<i32>} : memref<1x128x1xf32, #tpu.memory_space<vmem>>, vector<1x128x1xf32>,
    %19 = arith.mulf %13, %13 : vector<128x256xf32>
    %cst_14 = arith.constant dense<0.000000e+00> : vector<128xf32>
    %20 = vector.multi_reduction <add>, %19, %cst_14 [1] : vector<128x256xf32> to vector<128xf32>
    %21 = vector.shape_cast %20 : vector<128xf32> to vector<128x1xf32>
    %c0_15 = arith.constant 0 : index
    %c0_16 = arith.constant 0 : index
    %c0_17 = arith.constant 0 : index
    %22 = vector.load %arg8[%c0_15, %c0_16, %c0_17] : memref<1x128x1xf32, #tpu.memory_space<vmem>>, vector<1x128x1xf32>
    %23 = vector.shape_cast %22 : vector<1x128x1xf32> to vector<128x1xf32>
    %24 = vector.shape_cast %21 : vector<128x1xf32> to vector<1x128x1xf32>
    tpu.vector_store %arg8[%c0_15, %c0_16, %c0_17], %24 {strides = array<i32>} : memref<1x128x1xf32, #tpu.memory_space<vmem>>, vector<1x128x1xf32>,
    return
  }
  func.func @transform_0(%arg0: i32, %arg1: i32, %arg2: i32) -> (i32, i32, i32) {
    %c0_i32 = arith.constant 0 : i32
    %c0_i32_0 = arith.constant 0 : i32
    return %arg0, %c0_i32, %arg1 : i32, i32, i32
  }
  func.func @transform_1(%arg0: i32, %arg1: i32, %arg2: i32) -> (i32, i32) {
    %c0_i32 = arith.constant 0 : i32
    %c0_i32_0 = arith.constant 0 : i32
    %c0_i32_1 = arith.constant 0 : i32
    return %c0_i32, %c0_i32_0 : i32, i32
  }
  func.func @transform_2(%arg0: i32, %arg1: i32, %arg2: i32) -> (i32, i32) {
    %c0_i32 = arith.constant 0 : i32
    %c0_i32_0 = arith.constant 0 : i32
    return %arg2, %c0_i32 : i32, i32
  }
  func.func @transform_3(%arg0: i32, %arg1: i32, %arg2: i32) -> (i32, i32, i32) {
    %c0_i32 = arith.constant 0 : i32
    return %arg0, %arg2, %arg1 : i32, i32, i32
  }
  func.func @transform_4(%arg0: i32, %arg1: i32, %arg2: i32) -> (i32, i32, i32) {
    %c1_i32 = arith.constant 1 : i32
    %0 = arith.muli %arg0, %c1_i32 : i32
    %1 = arith.addi %0, %arg1 : i32
    %c0_i32 = arith.constant 0 : i32
    %c0_i32_0 = arith.constant 0 : i32
    return %1, %arg2, %c0_i32 : i32, i32, i32
  }
  func.func @transform_5(%arg0: i32, %arg1: i32, %arg2: i32) -> (i32, i32, i32) {
    %c1_i32 = arith.constant 1 : i32
    %0 = arith.muli %arg0, %c1_i32 : i32
    %1 = arith.addi %0, %arg1 : i32
    %c0_i32 = arith.constant 0 : i32
    %c0_i32_0 = arith.constant 0 : i32
    return %1, %arg2, %c0_i32 : i32, i32, i32
  }
}

module attributes {stable_mosaic.version = 11 : i64} {
  func.func @_bn_apply_kernel(%arg0: i32, %arg1: i32, %arg2: i32, %arg3: memref<1x128x256xbf16, #tpu.memory_space<vmem>>, %arg4: memref<128x1xf32, #tpu.memory_space<vmem>>, %arg5: memref<128x1xf32, #tpu.memory_space<vmem>>, %arg6: memref<1x128x256xf32, #tpu.memory_space<vmem>>) attributes {dimension_semantics = [#tpu.dimension_semantics<parallel>, #tpu.dimension_semantics<parallel>, #tpu.dimension_semantics<parallel>], iteration_bounds = array<i64: 2, 1, 1>, scalar_prefetch = 0 : i64, scratch_operands = 0 : i64, tpu.core_type = #tpu.core_type<tc>, window_params = [{transform_indices = @transform_0, window_bounds = array<i64: 1, 128, 256>}, {transform_indices = @transform_1, window_bounds = array<i64: 128, 1>}, {transform_indices = @transform_2, window_bounds = array<i64: 128, 1>}, {transform_indices = @transform_3, window_bounds = array<i64: 1, 128, 256>}]} {
    %c0 = arith.constant 0 : index
    %c0_0 = arith.constant 0 : index
    %c0_1 = arith.constant 0 : index
    %0 = vector.load %arg3[%c0, %c0_0, %c0_1] : memref<1x128x256xbf16, #tpu.memory_space<vmem>>, vector<1x128x256xbf16>
    %1 = vector.shape_cast %0 : vector<1x128x256xbf16> to vector<128x256xbf16>
    %2 = arith.extf %1 : vector<128x256xbf16> to vector<128x256xf32>
    %c0_2 = arith.constant 0 : index
    %c0_3 = arith.constant 0 : index
    %3 = vector.load %arg4[%c0_2, %c0_3] : memref<128x1xf32, #tpu.memory_space<vmem>>, vector<128x1xf32>
    %4 = vector.broadcast %3 : vector<128x1xf32> to vector<128x256xf32>
    %5 = arith.mulf %2, %4 : vector<128x256xf32>
    %c0_4 = arith.constant 0 : index
    %c0_5 = arith.constant 0 : index
    %6 = vector.load %arg5[%c0_4, %c0_5] : memref<128x1xf32, #tpu.memory_space<vmem>>, vector<128x1xf32>
    %7 = vector.broadcast %6 : vector<128x1xf32> to vector<128x256xf32>
    %8 = arith.addf %5, %7 : vector<128x256xf32>
    %c0_6 = arith.constant 0 : index
    %c0_7 = arith.constant 0 : index
    %c0_8 = arith.constant 0 : index
    %9 = vector.load %arg6[%c0_6, %c0_7, %c0_8] : memref<1x128x256xf32, #tpu.memory_space<vmem>>, vector<1x128x256xf32>
    %10 = vector.shape_cast %9 : vector<1x128x256xf32> to vector<128x256xf32>
    %11 = vector.shape_cast %8 : vector<128x256xf32> to vector<1x128x256xf32>
    tpu.vector_store %arg6[%c0_6, %c0_7, %c0_8], %11 {strides = array<i32>} : memref<1x128x256xf32, #tpu.memory_space<vmem>>, vector<1x128x256xf32>,
    return
  }
  func.func @transform_0(%arg0: i32, %arg1: i32, %arg2: i32) -> (i32, i32, i32) {
    %c0_i32 = arith.constant 0 : i32
    return %arg0, %arg1, %arg2 : i32, i32, i32
  }
  func.func @transform_1(%arg0: i32, %arg1: i32, %arg2: i32) -> (i32, i32) {
    %c0_i32 = arith.constant 0 : i32
    %c0_i32_0 = arith.constant 0 : i32
    return %arg1, %c0_i32 : i32, i32
  }
  func.func @transform_2(%arg0: i32, %arg1: i32, %arg2: i32) -> (i32, i32) {
    %c0_i32 = arith.constant 0 : i32
    %c0_i32_0 = arith.constant 0 : i32
    return %arg1, %c0_i32 : i32, i32
  }
  func.func @transform_3(%arg0: i32, %arg1: i32, %arg2: i32) -> (i32, i32, i32) {
    %c0_i32 = arith.constant 0 : i32
    return %arg0, %arg1, %arg2 : i32, i32, i32
  }
}

</mosaic_0001>

<bundles_post_ra>
// kernel: conv2drb_forward.2
= control target key start
LH: loop header
LB: loop body
LE: loop exit
PB: predicated region body
PF: predicated region fallthrough
CT: control target
= control target key end

     0   :  { %s1347_s18 = smov 0   ;;  %s1349_s19 = smov 0   ;;  %s1589_s0 = inlined_call_operand.vmem [shape: bf16[2,36,256], index: 0, kind: input, shape index: {}]   ;;  %s1590_s1 = inlined_call_operand.vmem [shape: bf16[128,36], index: 1, kind: input, shape index: {}]   ;;  %s1591_s2 = inlined_call_operand.vmem [shape: f32[128,1], index: 2, kind: input, shape index: {}]   ;;  %s1592_s3 = inlined_call_operand.vmem [shape: bf16[2,128,256], index: 3, kind: output, shape index: {0}]   ;;  %s1593_s4 = inlined_call_operand.vmem [shape: f32[2,128,1], index: 4, kind: output, shape index: {1}]   ;;  %s1594_s5 = inlined_call_operand.vmem [shape: f32[2,128,1], index: 5, kind: output, shape index: {2}]  }
   0x1   :  { %s1351_s20 = smov 0  }
   0x2 LB: > { %s35_s21 = sadd.s32 1, %s1310_s19  ;;  %p1168_p0 = scmp.ge.s32.totalorder %s1314_s20, 1  ;;  %s1314_s20 = sphi %s1351_s20, %s16_s20   ;;  %s1310_s19 = sphi %s1349_s19, %s1596_s19   ;;  %s1306_s18 = sphi %s1347_s18, %s1595_s18  }
   0x3   : > { %p37_p1 = scmp.ge.s32.totalorder %s35_s21, 2  ;;  %p241_p2 = scmp.lt.s32.totalorder %s1314_s20, 3 }
   0x5   : > { %s1598_s21 = smov (%p37_p1, %s35_s21), 0  ;;  %p242_p3 = pnand %p1168_p0, %p241_p2 }
   0x6   : > { %p308_p4 = scmp.lt.s32.totalorder (!%p242_p3), %s1306_s18, 1 }
   0x7   : > { %245 = sbr.rel (%p242_p3) target bundleno = 375 (0x177), region = 32 }
   0xc   : > { %v385_v0 = vld [vmem:[%s1591_s2] sm:$0xff]  ;;  %v387_v1 = vld [vmem:[%s1591_s2 + $0x10] sm:$0xff]  ;;  %v1316_v2 = vmov 0   ;;  %s1600_s18 = smov (!%p308_p4, %s1306_s18), 1  ;;  %v386_v4 = vld [vmem:[%s1591_s2 + $0x8] sm:$0xff]  ;;  %vm571_vm0 = vcmask 1041408  }
   0xd   : > { %1289 = vset.pattern.permute.xlu0 %v1316_v2  ;;  %1290 = vset.pattern.permute.xlu1 %v1316_v2  ;;  %v389_v3 = vld [vmem:[%s1591_s2 + $0x20] sm:$0xff]  ;;  %s1263_s28 = smul.u32 40, %s1600_s18  ;;  %v388_v6 = vld [vmem:[%s1591_s2 + $0x18] sm:$0xff]  ;;  %v390_v9 = vld [vmem:[%s1591_s2 + $0x28] sm:$0xff]  ;;  %vm546_vm1 = vcmask 293888   ;;  %s1464_s7 = sshll.u32 %s1600_s18, 7 }
   0xe   : > { %403 = vperm.xlu0 %1289, %v385_v0   ;;  %413 = vperm.xlu1 %1290, %v387_v1   ;;  %v391_v24 = vld [vmem:[%s1591_s2 + $0x30] sm:$0xff]  ;;  %v392_v25 = vld [vmem:[%s1591_s2 + $0x38] sm:$0xff]  ;;  %v393_v27 = vld [vmem:[%s1591_s2 + $0x40] sm:$0xff]  ;;  %s1474_s10 = scalar_lea.vmem %s1592_s3, %s1464_s7  ;;  %s1508_s12 = scalar_lea.vmem %s1593_s4, %s1464_s7  ;;  %vm820_vm2 = vcmask 7168  }
   0xf   : > { %1291 = vset.pattern.permute.xlu2 %v1316_v2  ;;  %s315_s6 = scalar_lea.vmem %s1589_s0, %s1263_s28  ;;  %v1245_v29 = vld [vmem:[%s1590_s1] sm:$0xff]  ;;  %v394_v31 = vld [vmem:[%s1591_s2 + $0x48] sm:$0xff]  ;;  %v395_v32 = vld [vmem:[%s1591_s2 + $0x50] sm:$0xff]  ;;  %s1516_s15 = scalar_lea.vmem %s1594_s5, %s1464_s7 }
  0x10   : > { %423 = vperm.xlu2 %1291, %v389_v3   ;;  %v384_v5 = vld [vmem:[%s315_s6 + $0x20] sm:$0x33]  ;;  %v1218_v12 = vld [vmem:[%s315_s6 + $0x10] sm:$0xf]  ;;  %v1256_v13 = vld [vmem:[%s315_s6 + $0x14] sm:$0xf0] }
  0x11   : > { %v534_v7 = vunpack.c.l.b16 %v384_v5  ;;  %v535_v8 = vunpack.c.h.b16 %v384_v5  ;;  %v1255_v14 = vld [vmem:[%s315_s6 + $0x14] sm:$0xf]  ;;  %v1220_v15 = vld [vmem:[%s315_s6 + $0x18] sm:$0xf0]  ;;  %v1219_v18 = vor.u32 %v1256_v13, %v1218_v12  ;;  %v1210_v20 = vld [vmem:[%s315_s6] sm:$0xf] }
  0x12   : > { %v1223_v19 = vor.u32 %v1255_v14, %v1220_v15  ;;  %v1254_v21 = vld [vmem:[%s315_s6 + $0x4] sm:$0xf0]  ;;  %v1253_v22 = vld [vmem:[%s315_s6 + $0x4] sm:$0xf]  ;;  %v1212_v23 = vld [vmem:[%s315_s6 + $0x8] sm:$0xf0] }
  0x13   : > { %v540_v10 = vpack.c.b16 %v534_v7, %v534_v7  ;;  %v541_v11 = vpack.c.b16 %v535_v8, %v535_v8  ;;  %v1211_v26 = vor.u32 %v1254_v21, %v1210_v20  ;;  %v1215_v28 = vor.u32 %v1253_v22, %v1212_v23  ;;  %v1249_v30 = vld [vmem:[%s1590_s1 + $0x20] sm:$0xff]  ;;  %v396_v33 = vld [vmem:[%s1591_s2 + $0x58] sm:$0xff]  ;;  %v398_v35 = vld [vmem:[%s1591_s2 + $0x68] sm:$0xff] }
  0x14   : > { %v397_v34 = vld [vmem:[%s1591_s2 + $0x60] sm:$0xff]  ;;  %v399_v36 = vld [vmem:[%s1591_s2 + $0x70] sm:$0xff]  ;;  %v1246_v37 = vld [vmem:[%s1590_s1 + $0x8] sm:$0xff] }
  0x15   : > { %v573_v16 = vsel %vm571_vm0, %v540_v10, 0  ;;  %v576_v17 = vsel %vm571_vm0, %v541_v11, 0  ;;  %v1250_v38 = vld [vmem:[%s1590_s1 + $0x28] sm:$0xff]  ;;  %v400_v39 = vld [vmem:[%s1591_s2 + $0x78] sm:$0xff]  ;;  %v1247_v40 = vld [vmem:[%s1590_s1 + $0x10] sm:$0xff] }
  0x16   : > { %408 = vperm.xlu0 %1289, %v386_v4   ;;  %418 = vperm.xlu1 %1290, %v388_v6   ;;  %v1251_v41 = vld [vmem:[%s1590_s1 + $0x30] sm:$0xff]  ;;  %v1248_v42 = vld [vmem:[%s1590_s1 + $0x18] sm:$0xff] }
  0x17   : > { %583 = vmatpush.bf16.msra.mxu0 %v573_v16  ;;  %1257 = vmatpush.bf16.msra.mxu2 %v573_v16  ;;  %v1252_v43 = vld [vmem:[%s1590_s1 + $0x38] sm:$0xff] }
  0x18   : > { %428 = vperm.xlu2 %1291, %v390_v9   ;;  %632 = vmatpush.bf16.msra.mxu1 %v576_v17 }
  0x19   : > { %1260 = vmatpush.bf16.msra.mxu3 %v576_v17 }
  0x1b   : > { %584 = vmatpush.bf16.msra.mxu0 %v1219_v18  ;;  %1258 = vmatpush.bf16.msra.mxu2 %v1219_v18 }
  0x1c   : > { %633 = vmatpush.bf16.msra.mxu1 %v1223_v19 }
  0x1d   : > { %1261 = vmatpush.bf16.msra.mxu3 %v1223_v19 }
  0x1e   : > { %433 = vperm.xlu0 %1289, %v391_v24   ;;  %438 = vperm.xlu1 %1290, %v392_v25  }
  0x1f   : > { %585 = vmatpush.bf16.msra.mxu0 %v1211_v26  ;;  %1259 = vmatpush.bf16.msra.mxu2 %v1211_v26 }
  0x20   : > { %443 = vperm.xlu2 %1291, %v393_v27   ;;  %634 = vmatpush.bf16.msra.mxu1 %v1215_v28 }
  0x21   : > { %1262 = vmatpush.bf16.msra.mxu3 %v1215_v28 }
  0x22   : > { %1224 = vmatmul.msk.bf16.vlgmr.msra.gmra.mxu0 %vm546_vm1, %v1245_v29  ;;  %1228 = vmatmul.msk.bf16.vlgmr.msra.gmra.mxu2 %vm546_vm1, %v1249_v30 }
  0x23   : > { %1232 = vmatmul.msk.bf16.vlgmr.msra.gmra.mxu1 %vm546_vm1, %v1245_v29 }
  0x24   : > { %1236 = vmatmul.msk.bf16.vlgmr.msra.gmra.mxu3 %vm546_vm1, %v1249_v30 }
  0x26   : > { %448 = vperm.xlu0 %1289, %v394_v31   ;;  %453 = vperm.xlu1 %1290, %v395_v32  }
  0x28   : > { %458 = vperm.xlu2 %1291, %v396_v33  }
  0x2e   : > { %463 = vperm.xlu0 %1289, %v397_v34   ;;  %468 = vperm.xlu1 %1290, %v398_v35  }
  0x30   : > { %473 = vperm.xlu2 %1291, %v399_v36  }
  0x32   : > { %1225 = vmatmul.msk.bf16.gmra.mxu0 %vm546_vm1, %v1246_v37  ;;  %1229 = vmatmul.msk.bf16.gmra.mxu2 %vm546_vm1, %v1250_v38 }
  0x33   : > { %1233 = vmatmul.msk.bf16.gmra.mxu1 %vm546_vm1, %v1246_v37 }
  0x34   : > { %1237 = vmatmul.msk.bf16.gmra.mxu3 %vm546_vm1, %v1250_v38 }
  0x36   : > { %478 = vperm.xlu0 %1289, %v400_v39  }
  0x42   : > { %1226 = vmatmul.msk.bf16.gmra.mxu0 %vm546_vm1, %v1247_v40  ;;  %1230 = vmatmul.msk.bf16.gmra.mxu2 %vm546_vm1, %v1251_v41 }
  0x43   : > { %1234 = vmatmul.msk.bf16.gmra.mxu1 %vm546_vm1, %v1247_v40 }
  0x44   : > { %1238 = vmatmul.msk.bf16.gmra.mxu3 %vm546_vm1, %v1251_v41 }
  0x52   : > { %1227 = vmatmul.msk.bf16.gmra.mxu0 %vm546_vm1, %v1248_v42  ;;  %1231 = vmatmul.msk.bf16.gmra.mxu2 %vm546_vm1, %v1252_v43 }
  0x53   : > { %1235 = vmatmul.msk.bf16.gmra.mxu1 %vm546_vm1, %v1248_v42 }
  0x54   : > { %1239 = vmatmul.msk.bf16.gmra.mxu3 %vm546_vm1, %v1252_v43 }
  0x6a   : > { %v1459_v45 = vpop.permute.xlu2 %423 }
  0x72   : > { %v1461_v48 = vpop.permute.xlu2 %428 }
  0x7a   : > { %v444_v57 = vpop.permute.xlu2 %443 }
  0x80   : > { %v404_v44 = vpop.permute.xlu0 %403  ;;  %v414_v46 = vpop.permute.xlu1 %413 }
  0x88   : > { %v409_v47 = vpop.permute.xlu0 %408  ;;  %v1466_v52 = vpop.permute.xlu1 %418 }
  0x90   : > { %v1468_v55 = vpop.permute.xlu0 %433  ;;  %v1477_v9 = vpop.permute.xlu1 %438 }
  0x98   : > { %v449_v13 = vpop.permute.xlu0 %448  ;;  %v454_v38 = vpop.permute.xlu1 %453 }
  0x9f   : > { %v587_v49 = vpop.f32.mrf.mxu0 }
  0xa0   : > { %v588_v50 = vadd.f32 %v587_v49, %v404_v44  ;;  %v636_v51 = vpop.f32.mrf.mxu1 }
  0xa1   : > { %v637_v53 = vadd.f32 %v636_v51, %v404_v44 }
  0xa2   : > { %v676_v54 = vmax.f32 %v588_v50, 0.0 }
  0xa3   : > { %v677_v56 = vmax.f32 %v637_v53, 0.0 }
  0xa5   : > { %v708_v58 = vpack.c.bf16 %v677_v56, %v676_v54  ;;  %v607_v59 = vpop.f32.mrf.mxu2 }
  0xa6   : > { %v608_v60 = vadd.f32 %v607_v59, %v444_v57 }
  0xa7   : > { %v656_v61 = vpop.f32.mrf.mxu3  ;;  %724 = vst [vmem:[%s1474_s10] sm:$0xff] %v708_v58  ;;  %v589_v63 = vpop.f32.mrf.mxu0  ;;  %v740_v0 = vunpack.c.l.bf16 %v708_v58  ;;  %v741_v1 = vunpack.c.h.bf16 %v708_v58 }
  0xa8   : > { %v657_v62 = vadd.f32 %v656_v61, %v444_v57  ;;  %v692_v2 = vmax.f32 %v608_v60, 0.0  ;;  %v590_v3 = vadd.f32 %v589_v63, %v409_v47  ;;  %v638_v4 = vpop.f32.mrf.mxu1 }
  0xa9   : > { %v639_v6 = vadd.f32 %v638_v4, %v409_v47  ;;  %v772_v7 = vadd.f32 %v741_v1, %v740_v0  ;;  %v837_v12 = vmul.f32 %v740_v0, %v740_v0  ;;  %v838_v18 = vmul.f32 %v741_v1, %v741_v1  ;;  %v459_v4 = vpop.permute.xlu2 %458 }
  0xaa   : > { %v693_v5 = vmax.f32 %v657_v62, 0.0  ;;  %v678_v8 = vmax.f32 %v590_v3, 0.0 }
  0xab   : > { %v679_v11 = vmax.f32 %v639_v6, 0.0  ;;  %773 = vadd.xlane.f32.xlu1 %v772_v7  ;;  %v869_v32 = vadd.f32 %v838_v18, %v837_v12 }
  0xac   : > { %v716_v10 = vpack.c.bf16 %v693_v5, %v692_v2 }
  0xad   : > { %v709_v14 = vpack.c.bf16 %v679_v11, %v678_v8  ;;  %v609_v15 = vpop.f32.mrf.mxu2 }
  0xae   : > { %732 = vst [vmem:[%s1474_s10 + $0x40] sm:$0xff] %v716_v10  ;;  %v756_v16 = vunpack.c.l.bf16 %v716_v10  ;;  %v757_v17 = vunpack.c.h.bf16 %v716_v10  ;;  %v610_v19 = vadd.f32 %v609_v15, %v449_v13 }
  0xaf   : > { %v658_v20 = vpop.f32.mrf.mxu3  ;;  %725 = vst [vmem:[%s1474_s10 + $0x8] sm:$0xff] %v709_v14  ;;  %v592_v22 = vpop.f32.mrf.mxu0  ;;  %v742_v36 = vunpack.c.l.bf16 %v709_v14  ;;  %v743_v37 = vunpack.c.h.bf16 %v709_v14 }
  0xb0   : > { %v659_v21 = vadd.f32 %v658_v20, %v449_v13  ;;  %v796_v23 = vadd.f32 %v757_v17, %v756_v16  ;;  %v853_v24 = vmul.f32 %v756_v16, %v756_v16  ;;  %v854_v25 = vmul.f32 %v757_v17, %v757_v17  ;;  %v641_v28 = vpop.f32.mrf.mxu1 }
  0xb1   : > { %v694_v26 = vmax.f32 %v610_v19, 0.0  ;;  %v593_v27 = vadd.f32 %v592_v22, %v414_v46  ;;  %v642_v30 = vadd.f32 %v641_v28, %v414_v46  ;;  %v775_v49 = vadd.f32 %v743_v37, %v742_v36 }
  0xb2   : > { %v695_v29 = vmax.f32 %v659_v21, 0.0  ;;  %797 = vadd.xlane.f32.xlu2 %v796_v23  ;;  %v893_v31 = vadd.f32 %v854_v25, %v853_v24  ;;  %v839_v0 = vmul.f32 %v742_v36, %v742_v36  ;;  %v840_v1 = vmul.f32 %v743_v37, %v743_v37 }
  0xb3   : > { %v680_v33 = vmax.f32 %v593_v27, 0.0  ;;  %v681_v35 = vmax.f32 %v642_v30, 0.0  ;;  %870 = vadd.xlane.f32.xlu1 %v869_v32  ;;  %v464_v27 = vpop.permute.xlu0 %463 }
  0xb4   : > { %v717_v34 = vpack.c.bf16 %v695_v29, %v694_v26  ;;  %894 = vadd.xlane.f32.xlu0 %v893_v31  ;;  %v872_v13 = vadd.f32 %v840_v1, %v839_v0 }
  0xb5   : > { %v710_v39 = vpack.c.bf16 %v681_v35, %v680_v33  ;;  %v612_v40 = vpop.f32.mrf.mxu2 }
  0xb6   : > { %733 = vst [vmem:[%s1474_s10 + $0x48] sm:$0xff] %v717_v34  ;;  %v758_v41 = vunpack.c.l.bf16 %v717_v34  ;;  %v759_v42 = vunpack.c.h.bf16 %v717_v34  ;;  %v613_v43 = vadd.f32 %v612_v40, %v454_v38 }
  0xb7   : > { %v661_v44 = vpop.f32.mrf.mxu3  ;;  %726 = vst [vmem:[%s1474_s10 + $0x10] sm:$0xff] %v710_v39  ;;  %v594_v47 = vpop.f32.mrf.mxu0  ;;  %v744_v2 = vunpack.c.l.bf16 %v710_v39  ;;  %v745_v3 = vunpack.c.h.bf16 %v710_v39 }
  0xb8   : > { %v662_v46 = vadd.f32 %v661_v44, %v454_v38  ;;  %v855_v50 = vmul.f32 %v758_v41, %v758_v41  ;;  %v856_v51 = vmul.f32 %v759_v42, %v759_v42  ;;  %v696_v53 = vmax.f32 %v613_v43, 0.0  ;;  %v643_v56 = vpop.f32.mrf.mxu1 }
  0xb9   : > { %v595_v54 = vadd.f32 %v594_v47, %v1466_v52  ;;  %v644_v58 = vadd.f32 %v643_v56, %v1466_v52  ;;  %v799_v59 = vadd.f32 %v759_v42, %v758_v41  ;;  %v778_v17 = vadd.f32 %v745_v3, %v744_v2 }
  0xba   : > { %v697_v57 = vmax.f32 %v662_v46, 0.0  ;;  %776 = vadd.xlane.f32.xlu2 %v775_v49  ;;  %v896_v60 = vadd.f32 %v856_v51, %v855_v50  ;;  %v841_v26 = vmul.f32 %v744_v2, %v744_v2  ;;  %v842_v30 = vmul.f32 %v745_v3, %v745_v3 }
  0xbb   : > { %v682_v61 = vmax.f32 %v595_v54, 0.0  ;;  %v683_v63 = vmax.f32 %v644_v58, 0.0 }
  0xbc   : > { %v718_v62 = vpack.c.bf16 %v697_v57, %v696_v53  ;;  %800 = vadd.xlane.f32.xlu0 %v799_v59  ;;  %897 = vadd.xlane.f32.xlu1 %v896_v60  ;;  %v875_v44 = vadd.f32 %v842_v30, %v841_v26  ;;  %v469_v59 = vpop.permute.xlu1 %468 }
  0xbd   : > { %v711_v5 = vpack.c.bf16 %v683_v63, %v682_v61  ;;  %v614_v6 = vpop.f32.mrf.mxu2 }
  0xbe   : > { %734 = vst [vmem:[%s1474_s10 + $0x50] sm:$0xff] %v718_v62  ;;  %v760_v7 = vunpack.c.l.bf16 %v718_v62  ;;  %v761_v8 = vunpack.c.h.bf16 %v718_v62  ;;  %v615_v52 = vadd.f32 %v614_v6, %v459_v4 }
  0xbf   : > { %v663_v10 = vpop.f32.mrf.mxu3  ;;  %727 = vst [vmem:[%s1474_s10 + $0x18] sm:$0xff] %v711_v5  ;;  %v597_v12 = vpop.f32.mrf.mxu0  ;;  %v746_v21 = vunpack.c.l.bf16 %v711_v5  ;;  %v747_v22 = vunpack.c.h.bf16 %v711_v5 }
  0xc0   : > { %v664_v11 = vadd.f32 %v663_v10, %v459_v4  ;;  %v698_v14 = vmax.f32 %v615_v52, 0.0  ;;  %v598_v15 = vadd.f32 %v597_v12, %v1459_v45  ;;  %v646_v16 = vpop.f32.mrf.mxu1  ;;  %v802_v18 = vadd.f32 %v761_v8, %v760_v7 }
  0xc1   : > { %v647_v20 = vadd.f32 %v646_v16, %v1459_v45  ;;  %v843_v31 = vmul.f32 %v746_v21, %v746_v21  ;;  %v844_v32 = vmul.f32 %v747_v22, %v747_v22  ;;  %v781_v36 = vadd.f32 %v747_v22, %v746_v21 }
  0xc2   : > { %v699_v19 = vmax.f32 %v664_v11, 0.0  ;;  %873 = vadd.xlane.f32.xlu2 %v872_v13  ;;  %v684_v23 = vmax.f32 %v598_v15, 0.0  ;;  %v857_v51 = vmul.f32 %v760_v7, %v760_v7  ;;  %v858_v53 = vmul.f32 %v761_v8, %v761_v8 }
  0xc3   : > { %v685_v25 = vmax.f32 %v647_v20, 0.0  ;;  %v878_v46 = vadd.f32 %v844_v32, %v843_v31 }
  0xc4   : > { %v719_v24 = vpack.c.bf16 %v699_v19, %v698_v14  ;;  %779 = vadd.xlane.f32.xlu0 %v778_v17  ;;  %803 = vadd.xlane.f32.xlu1 %v802_v18  ;;  %v899_v1 = vadd.f32 %v858_v53, %v857_v51  ;;  %v474_v14 = vpop.permute.xlu2 %473 }
  0xc5   : > { %v712_v28 = vpack.c.bf16 %v685_v25, %v684_v23  ;;  %v617_v29 = vpop.f32.mrf.mxu2 }
  0xc6   : > { %735 = vst [vmem:[%s1474_s10 + $0x58] sm:$0xff] %v719_v24  ;;  %v618_v33 = vadd.f32 %v617_v29, %v464_v27  ;;  %v762_v40 = vunpack.c.l.bf16 %v719_v24  ;;  %v763_v41 = vunpack.c.h.bf16 %v719_v24 }
  0xc7   : > { %v666_v34 = vpop.f32.mrf.mxu3  ;;  %728 = vst [vmem:[%s1474_s10 + $0x20] sm:$0xff] %v712_v28  ;;  %v599_v35 = vpop.f32.mrf.mxu0  ;;  %v748_v57 = vunpack.c.l.bf16 %v712_v28  ;;  %v749_v58 = vunpack.c.h.bf16 %v712_v28 }
  0xc8   : > { %v667_v45 = vadd.f32 %v666_v34, %v464_v27  ;;  %v700_v37 = vmax.f32 %v618_v33, 0.0  ;;  %v600_v38 = vadd.f32 %v599_v35, %v1461_v48  ;;  %v648_v39 = vpop.f32.mrf.mxu1  ;;  %v859_v54 = vmul.f32 %v762_v40, %v762_v40 }
  0xc9   : > { %v649_v43 = vadd.f32 %v648_v39, %v1461_v48  ;;  %v860_v56 = vmul.f32 %v763_v41, %v763_v41  ;;  %v784_v6 = vadd.f32 %v749_v58, %v748_v57  ;;  %v805_v22 = vadd.f32 %v763_v41, %v762_v40 }
  0xca   : > { %v701_v42 = vmax.f32 %v667_v45, 0.0  ;;  %782 = vadd.xlane.f32.xlu2 %v781_v36  ;;  %v686_v47 = vmax.f32 %v600_v38, 0.0  ;;  %v845_v45 = vmul.f32 %v748_v57, %v748_v57  ;;  %v846_v35 = vmul.f32 %v749_v58, %v749_v58  ;;  %v479_v38 = vpop.permute.xlu0 %478 }
  0xcb   : > { %v687_v50 = vmax.f32 %v649_v43, 0.0  ;;  %v902_v5 = vadd.f32 %v860_v56, %v859_v54 }
  0xcc   : > { %v720_v49 = vpack.c.bf16 %v701_v42, %v700_v37  ;;  %876 = vadd.xlane.f32.xlu0 %v875_v44  ;;  %879 = vadd.xlane.f32.xlu1 %v878_v46  ;;  %v881_v46 = vadd.f32 %v846_v35, %v845_v45 }
  0xcd   : > { %v713_v60 = vpack.c.bf16 %v687_v50, %v686_v47  ;;  %v619_v48 = vpop.f32.mrf.mxu2 }
  0xce   : > { %736 = vst [vmem:[%s1474_s10 + $0x60] sm:$0xff] %v720_v49  ;;  %v620_v61 = vadd.f32 %v619_v48, %v469_v59  ;;  %v764_v52 = vunpack.c.l.bf16 %v720_v49  ;;  %v765_v10 = vunpack.c.h.bf16 %v720_v49 }
  0xcf   : > { %v668_v62 = vpop.f32.mrf.mxu3  ;;  %729 = vst [vmem:[%s1474_s10 + $0x28] sm:$0xff] %v713_v60  ;;  %v602_v0 = vpop.f32.mrf.mxu0  ;;  %v750_v26 = vunpack.c.l.bf16 %v713_v60  ;;  %v751_v27 = vunpack.c.h.bf16 %v713_v60 }
  0xd0   : > { %v669_v63 = vadd.f32 %v668_v62, %v469_v59  ;;  %v702_v2 = vmax.f32 %v620_v61, 0.0  ;;  %v603_v3 = vadd.f32 %v602_v0, %v1468_v55  ;;  %v651_v4 = vpop.f32.mrf.mxu1  ;;  %v861_v17 = vmul.f32 %v764_v52, %v764_v52 }
  0xd1   : > { %v652_v8 = vadd.f32 %v651_v4, %v1468_v55  ;;  %v862_v18 = vmul.f32 %v765_v10, %v765_v10  ;;  %v808_v30 = vadd.f32 %v765_v10, %v764_v52  ;;  %v847_v36 = vmul.f32 %v750_v26, %v750_v26 }
  0xd2   : > { %v703_v7 = vmax.f32 %v669_v63, 0.0  ;;  %900 = vadd.xlane.f32.xlu2 %v899_v1  ;;  %v688_v11 = vmax.f32 %v603_v3, 0.0  ;;  %v848_v37 = vmul.f32 %v751_v27, %v751_v27  ;;  %v787_v59 = vadd.f32 %v751_v27, %v750_v26 }
  0xd3   : > { %v689_v13 = vmax.f32 %v652_v8, 0.0  ;;  %v905_v31 = vadd.f32 %v862_v18, %v861_v17 }
  0xd4   : > { %v721_v12 = vpack.c.bf16 %v703_v7, %v702_v2  ;;  %903 = vadd.xlane.f32.xlu0 %v902_v5  ;;  %785 = vadd.xlane.f32.xlu1 %v784_v6  ;;  %v884_v49 = vadd.f32 %v848_v37, %v847_v36 }
  0xd5   : > { %v714_v15 = vpack.c.bf16 %v689_v13, %v688_v11  ;;  %v622_v16 = vpop.f32.mrf.mxu2 }
  0xd6   : > { %737 = vst [vmem:[%s1474_s10 + $0x68] sm:$0xff] %v721_v12  ;;  %v623_v19 = vadd.f32 %v622_v16, %v474_v14  ;;  %v766_v41 = vunpack.c.l.bf16 %v721_v12  ;;  %v767_v42 = vunpack.c.h.bf16 %v721_v12 }
  0xd7   : > { %v671_v20 = vpop.f32.mrf.mxu3  ;;  %730 = vst [vmem:[%s1474_s10 + $0x30] sm:$0xff] %v714_v15  ;;  %v604_v55 = vpop.f32.mrf.mxu0  ;;  %v752_v53 = vunpack.c.l.bf16 %v714_v15  ;;  %v753_v54 = vunpack.c.h.bf16 %v714_v15 }
  0xd8   : > { %v672_v21 = vadd.f32 %v671_v20, %v474_v14  ;;  %v704_v23 = vmax.f32 %v623_v19, 0.0  ;;  %v605_v24 = vadd.f32 %v604_v55, %v1477_v9  ;;  %v653_v25 = vpop.f32.mrf.mxu1  ;;  %v811_v51 = vadd.f32 %v767_v42, %v766_v41 }
  0xd9   : > { %v654_v29 = vadd.f32 %v653_v25, %v1477_v9  ;;  %v849_v57 = vmul.f32 %v752_v53, %v752_v53  ;;  %v850_v58 = vmul.f32 %v753_v54, %v753_v54  ;;  %v790_v60 = vadd.f32 %v753_v54, %v752_v53 }
  0xda   : > { %v705_v28 = vmax.f32 %v672_v21, 0.0  ;;  %806 = vadd.xlane.f32.xlu2 %v805_v22  ;;  %v690_v32 = vmax.f32 %v605_v24, 0.0  ;;  %v863_v15 = vmul.f32 %v766_v41, %v766_v41  ;;  %v864_v16 = vmul.f32 %v767_v42, %v767_v42 }
  0xdb   : > { %v691_v34 = vmax.f32 %v654_v29, 0.0  ;;  %v887_v48 = vadd.f32 %v850_v58, %v849_v57 }
  0xdc   : > { %v722_v33 = vpack.c.bf16 %v705_v28, %v704_v23  ;;  %809 = vadd.xlane.f32.xlu0 %v808_v30  ;;  %906 = vadd.xlane.f32.xlu1 %v905_v31  ;;  %v908_v17 = vadd.f32 %v864_v16, %v863_v15 }
  0xdd   : > { %v715_v39 = vpack.c.bf16 %v691_v34, %v690_v32  ;;  %v624_v40 = vpop.f32.mrf.mxu2 }
  0xde   : > { %738 = vst [vmem:[%s1474_s10 + $0x70] sm:$0xff] %v722_v33  ;;  %v625_v9 = vadd.f32 %v624_v40, %v479_v38  ;;  %v768_v61 = vunpack.c.l.bf16 %v722_v33  ;;  %v769_v62 = vunpack.c.h.bf16 %v722_v33 }
  0xdf   : > { %v673_v43 = vpop.f32.mrf.mxu3  ;;  %731 = vst [vmem:[%s1474_s10 + $0x38] sm:$0xff] %v715_v39  ;;  %v754_v1 = vunpack.c.l.bf16 %v715_v39  ;;  %v755_v2 = vunpack.c.h.bf16 %v715_v39 }
  0xe0   : > { %v674_v44 = vadd.f32 %v673_v43, %v479_v38  ;;  %v706_v47 = vmax.f32 %v625_v9, 0.0  ;;  %v814_v3 = vadd.f32 %v769_v62, %v768_v61  ;;  %v865_v8 = vmul.f32 %v768_v61, %v768_v61 }
  0xe1   : > { %v793_v5 = vadd.f32 %v755_v2, %v754_v1  ;;  %v851_v6 = vmul.f32 %v754_v1, %v754_v1  ;;  %v852_v7 = vmul.f32 %v755_v2, %v755_v2  ;;  %v866_v52 = vmul.f32 %v769_v62, %v769_v62 }
  0xe2   : > { %v707_v50 = vmax.f32 %v674_v44, 0.0  ;;  %882 = vadd.xlane.f32.xlu2 %v881_v46 }
  0xe3   : > { %v890_v12 = vadd.f32 %v852_v7, %v851_v6  ;;  %v911_v13 = vadd.f32 %v866_v52, %v865_v8 }
  0xe4   : > { %v723_v56 = vpack.c.bf16 %v707_v50, %v706_v47  ;;  %885 = vadd.xlane.f32.xlu0 %v884_v49  ;;  %812 = vadd.xlane.f32.xlu1 %v811_v51 }
  0xe6   : > { %739 = vst [vmem:[%s1474_s10 + $0x78] sm:$0xff] %v723_v56  ;;  %v770_v63 = vunpack.c.l.bf16 %v723_v56  ;;  %v771_v0 = vunpack.c.h.bf16 %v723_v56 }
  0xe8   : > { %v817_v4 = vadd.f32 %v771_v0, %v770_v63  ;;  %v867_v10 = vmul.f32 %v770_v63, %v770_v63  ;;  %v868_v11 = vmul.f32 %v771_v0, %v771_v0 }
  0xea   : > { %788 = vadd.xlane.f32.xlu2 %v787_v59  ;;  %v914_v14 = vadd.f32 %v868_v11, %v867_v10 }
  0xec   : > { %791 = vadd.xlane.f32.xlu0 %v790_v60  ;;  %888 = vadd.xlane.f32.xlu1 %v887_v48 }
  0xf2   : > { %815 = vadd.xlane.f32.xlu2 %v814_v3 }
  0xf4   : > { %818 = vadd.xlane.f32.xlu0 %v817_v4  ;;  %794 = vadd.xlane.f32.xlu1 %v793_v5 }
  0xfa   : > { %891 = vadd.xlane.f32.xlu2 %v890_v12 }
  0xfc   : > { %912 = vadd.xlane.f32.xlu0 %v911_v13  ;;  %915 = vadd.xlane.f32.xlu1 %v914_v14 }
 0x102   : > { %909 = vadd.xlane.f32.xlu2 %v908_v17 }
 0x11e   : > { %v774_v18 = vpop.xlane.xlu1 %773 }
 0x11f   : > { %821 = vst.msk [vmem:[%s1508_s12] sm:$0xff] %vm820_vm2, %v774_v18 }
 0x125   : > { %v798_v19 = vpop.xlane.xlu2 %797 }
 0x126   : > { %829 = vst.msk [vmem:[%s1508_s12 + $0x40] sm:$0xff] %vm820_vm2, %v798_v19  ;;  %v871_v21 = vpop.xlane.xlu1 %870 }
 0x127   : > { %v895_v20 = vpop.xlane.xlu0 %894  ;;  %917 = vst.msk [vmem:[%s1516_s15] sm:$0xff] %vm820_vm2, %v871_v21 }
 0x128   : > { %925 = vst.msk [vmem:[%s1516_s15 + $0x40] sm:$0xff] %vm820_vm2, %v895_v20 }
 0x12d   : > { %v777_v55 = vpop.xlane.xlu2 %776 }
 0x12e   : > { %822 = vst.msk [vmem:[%s1508_s12 + $0x8] sm:$0xff] %vm820_vm2, %v777_v55 }
 0x12f   : > { %v801_v22 = vpop.xlane.xlu0 %800  ;;  %v898_v23 = vpop.xlane.xlu1 %897 }
 0x130   : > { %830 = vst.msk [vmem:[%s1508_s12 + $0x48] sm:$0xff] %vm820_vm2, %v801_v22 }
 0x131   : > { %926 = vst.msk [vmem:[%s1516_s15 + $0x48] sm:$0xff] %vm820_vm2, %v898_v23 }
 0x135   : > { %v874_v24 = vpop.xlane.xlu2 %873 }
 0x136   : > { %918 = vst.msk [vmem:[%s1516_s15 + $0x8] sm:$0xff] %vm820_vm2, %v874_v24 }
 0x137   : > { %v780_v25 = vpop.xlane.xlu0 %779  ;;  %v804_v26 = vpop.xlane.xlu1 %803 }
 0x138   : > { %823 = vst.msk [vmem:[%s1508_s12 + $0x10] sm:$0xff] %vm820_vm2, %v780_v25 }
 0x139   : > { %831 = vst.msk [vmem:[%s1508_s12 + $0x50] sm:$0xff] %vm820_vm2, %v804_v26 }
 0x13d   : > { %v783_v27 = vpop.xlane.xlu2 %782 }
 0x13e   : > { %824 = vst.msk [vmem:[%s1508_s12 + $0x18] sm:$0xff] %vm820_vm2, %v783_v27 }
 0x13f   : > { %v877_v28 = vpop.xlane.xlu0 %876  ;;  %v880_v29 = vpop.xlane.xlu1 %879 }
 0x140   : > { %919 = vst.msk [vmem:[%s1516_s15 + $0x10] sm:$0xff] %vm820_vm2, %v877_v28 }
 0x141   : > { %920 = vst.msk [vmem:[%s1516_s15 + $0x18] sm:$0xff] %vm820_vm2, %v880_v29 }
 0x145   : > { %v901_v30 = vpop.xlane.xlu2 %900 }
 0x146   : > { %927 = vst.msk [vmem:[%s1516_s15 + $0x50] sm:$0xff] %vm820_vm2, %v901_v30 }
 0x147   : > { %v904_v31 = vpop.xlane.xlu0 %903  ;;  %v786_v32 = vpop.xlane.xlu1 %785 }
 0x148   : > { %928 = vst.msk [vmem:[%s1516_s15 + $0x58] sm:$0xff] %vm820_vm2, %v904_v31 }
 0x149   : > { %825 = vst.msk [vmem:[%s1508_s12 + $0x20] sm:$0xff] %vm820_vm2, %v786_v32 }
 0x14d   : > { %v807_v33 = vpop.xlane.xlu2 %806 }
 0x14e   : > { %832 = vst.msk [vmem:[%s1508_s12 + $0x58] sm:$0xff] %vm820_vm2, %v807_v33 }
 0x14f   : > { %v810_v34 = vpop.xlane.xlu0 %809  ;;  %v907_v45 = vpop.xlane.xlu1 %906 }
 0x150   : > { %833 = vst.msk [vmem:[%s1508_s12 + $0x60] sm:$0xff] %vm820_vm2, %v810_v34 }
 0x151   : > { %929 = vst.msk [vmem:[%s1516_s15 + $0x60] sm:$0xff] %vm820_vm2, %v907_v45 }
 0x155   : > { %v883_v35 = vpop.xlane.xlu2 %882 }
 0x156   : > { %921 = vst.msk [vmem:[%s1516_s15 + $0x20] sm:$0xff] %vm820_vm2, %v883_v35 }
 0x157   : > { %v886_v36 = vpop.xlane.xlu0 %885  ;;  %v813_v37 = vpop.xlane.xlu1 %812 }
 0x158   : > { %922 = vst.msk [vmem:[%s1516_s15 + $0x28] sm:$0xff] %vm820_vm2, %v886_v36 }
 0x159   : > { %834 = vst.msk [vmem:[%s1508_s12 + $0x68] sm:$0xff] %vm820_vm2, %v813_v37 }
 0x15d   : > { %v789_v38 = vpop.xlane.xlu2 %788 }
 0x15e   : > { %826 = vst.msk [vmem:[%s1508_s12 + $0x28] sm:$0xff] %vm820_vm2, %v789_v38 }
 0x15f   : > { %v792_v39 = vpop.xlane.xlu0 %791  ;;  %v889_v40 = vpop.xlane.xlu1 %888 }
 0x160   : > { %827 = vst.msk [vmem:[%s1508_s12 + $0x30] sm:$0xff] %vm820_vm2, %v792_v39 }
 0x161   : > { %923 = vst.msk [vmem:[%s1516_s15 + $0x30] sm:$0xff] %vm820_vm2, %v889_v40 }
 0x165   : > { %v816_v41 = vpop.xlane.xlu2 %815 }
 0x166   : > { %835 = vst.msk [vmem:[%s1508_s12 + $0x70] sm:$0xff] %vm820_vm2, %v816_v41 }
 0x167   : > { %v819_v42 = vpop.xlane.xlu0 %818  ;;  %v795_v9 = vpop.xlane.xlu1 %794 }
 0x168   : > { %836 = vst.msk [vmem:[%s1508_s12 + $0x78] sm:$0xff] %vm820_vm2, %v819_v42 }
 0x169   : > { %828 = vst.msk [vmem:[%s1508_s12 + $0x38] sm:$0xff] %vm820_vm2, %v795_v9 }
 0x16d   : > { %v892_v43 = vpop.xlane.xlu2 %891 }
 0x16e   : > { %924 = vst.msk [vmem:[%s1516_s15 + $0x38] sm:$0xff] %vm820_vm2, %v892_v43 }
 0x16f   : > { %v913_v44 = vpop.xlane.xlu0 %912  ;;  %v916_v46 = vpop.xlane.xlu1 %915 }
 0x170   : > { %931 = vst.msk [vmem:[%s1516_s15 + $0x70] sm:$0xff] %vm820_vm2, %v913_v44 }
 0x171   : > { %932 = vst.msk [vmem:[%s1516_s15 + $0x78] sm:$0xff] %vm820_vm2, %v916_v46 }
 0x175   : > { %v910_v47 = vpop.xlane.xlu2 %909 }
 0x176   : > { %930 = vst.msk [vmem:[%s1516_s15 + $0x68] sm:$0xff] %vm820_vm2, %v910_v47 }
 0x177 PF: > { %s16_s20 = sadd.s32 1, %s1314_s20   ;;  %s1595_s18 = smov %s1310_s19 }
 0x178   : > { %p13_p5 = scmp.ge.s32.totalorder %s16_s20, 4   ;;  %s1596_s19 = smov %s1598_s21 }
 0x17a   :  { %15 = sbr.rel (!%p13_p5) target bundleno = 2 (0x2), region = 89 }

// kernel: conv2drb_forward.3
= control target key start
LH: loop header
LB: loop body
LE: loop exit
PB: predicated region body
PF: predicated region fallthrough
CT: control target
= control target key end

     0   :  { %s862_s12 = smov 0   ;;  %s864_s13 = smov 0   ;;  %s1087_s0 = inlined_call_operand.vmem [shape: bf16[2,128,256], index: 0, kind: input, shape index: {}]   ;;  %s1088_s1 = inlined_call_operand.vmem [shape: f32[128,1], index: 1, kind: input, shape index: {}]   ;;  %s1089_s2 = inlined_call_operand.vmem [shape: f32[128,1], index: 2, kind: input, shape index: {}]   ;;  %s1090_s3 = inlined_call_operand.vmem [shape: f32[2,128,256], index: 3, kind: output, shape index: {}]  }
   0x1   :  { %s866_s14 = smov 0  }
   0x2 LB: > { %s32_s15 = sadd.s32 1, %s835_s13  ;;  %p780_p0 = scmp.ge.s32.totalorder %s839_s14, 1  ;;  %s839_s14 = sphi %s866_s14, %s13_s14   ;;  %s835_s13 = sphi %s864_s13, %s1092_s13   ;;  %s831_s12 = sphi %s862_s12, %s1091_s12  }
   0x3   : > { %p34_p1 = scmp.ge.s32.totalorder %s32_s15, 2  ;;  %p197_p2 = scmp.lt.s32.totalorder %s839_s14, 3 }
   0x5   : > { %s1094_s15 = smov (%p34_p1, %s32_s15), 0  ;;  %p198_p3 = pnand %p780_p0, %p197_p2 }
   0x6   : > { %p251_p4 = scmp.lt.s32.totalorder (!%p198_p3), %s831_s12, 1 }
   0x7   : > { %201 = sbr.rel (%p198_p3) target bundleno = 216 (0xd8), region = 32 }
   0xc   : > { %v345_v0 = vld [vmem:[%s1088_s1 + $0x20] sm:$0xff]  ;;  %v343_v1 = vld [vmem:[%s1088_s1 + $0x10] sm:$0xff]  ;;  %v841_v3 = vmov 0   ;;  %v346_v4 = vld [vmem:[%s1088_s1 + $0x28] sm:$0xff]  ;;  %s1096_s12 = smov (!%p251_p4, %s831_s12), 1 }
   0xd   : > { %v341_v2 = vld [vmem:[%s1088_s1] sm:$0xff]  ;;  %816 = vset.pattern.permute.xlu2 %v841_v3  ;;  %815 = vset.pattern.permute.xlu1 %v841_v3  ;;  %v344_v5 = vld [vmem:[%s1088_s1 + $0x18] sm:$0xff]  ;;  %v342_v6 = vld [vmem:[%s1088_s1 + $0x8] sm:$0xff]  ;;  %s787_s7 = sshll.u32 %s1096_s12, 7  ;;  %s788_s11 = sshll.u32 %s1096_s12, 8 }
   0xe   : > { %814 = vset.pattern.permute.xlu0 %v841_v3  ;;  %379 = vperm.xlu2 %816, %v345_v0   ;;  %v349_v7 = vld [vmem:[%s1088_s1 + $0x40] sm:$0xff]  ;;  %v348_v8 = vld [vmem:[%s1088_s1 + $0x38] sm:$0xff]  ;;  %v347_v9 = vld [vmem:[%s1088_s1 + $0x30] sm:$0xff]  ;;  %s991_s10 = scalar_lea.vmem %s1087_s0, %s787_s7  ;;  %s1001_s18 = scalar_lea.vmem %s1090_s3, %s788_s11 }
   0xf   : > { %369 = vperm.xlu1 %815, %v343_v1   ;;  %359 = vperm.xlu0 %814, %v341_v2   ;;  %v352_v10 = vld [vmem:[%s1088_s1 + $0x58] sm:$0xff]  ;;  %v351_v11 = vld [vmem:[%s1088_s1 + $0x50] sm:$0xff]  ;;  %v350_v12 = vld [vmem:[%s1088_s1 + $0x48] sm:$0xff] }
  0x10   : > { %v355_v13 = vld [vmem:[%s1088_s1 + $0x70] sm:$0xff]  ;;  %v354_v14 = vld [vmem:[%s1088_s1 + $0x68] sm:$0xff]  ;;  %v353_v15 = vld [vmem:[%s1088_s1 + $0x60] sm:$0xff] }
  0x11   : > { %v470_v16 = vld [vmem:[%s1089_s2 + $0x8] sm:$0xff]  ;;  %v469_v17 = vld [vmem:[%s1089_s2] sm:$0xff]  ;;  %v356_v18 = vld [vmem:[%s1088_s1 + $0x78] sm:$0xff] }
  0x12   : > { %v473_v19 = vld [vmem:[%s1089_s2 + $0x20] sm:$0xff]  ;;  %v472_v20 = vld [vmem:[%s1089_s2 + $0x18] sm:$0xff]  ;;  %v471_v21 = vld [vmem:[%s1089_s2 + $0x10] sm:$0xff] }
  0x13   : > { %v476_v22 = vld [vmem:[%s1089_s2 + $0x38] sm:$0xff]  ;;  %v475_v23 = vld [vmem:[%s1089_s2 + $0x30] sm:$0xff]  ;;  %v474_v24 = vld [vmem:[%s1089_s2 + $0x28] sm:$0xff] }
  0x14   : > { %v479_v25 = vld [vmem:[%s1089_s2 + $0x50] sm:$0xff]  ;;  %v478_v26 = vld [vmem:[%s1089_s2 + $0x48] sm:$0xff]  ;;  %v477_v27 = vld [vmem:[%s1089_s2 + $0x40] sm:$0xff] }
  0x15   : > { %v482_v28 = vld [vmem:[%s1089_s2 + $0x68] sm:$0xff]  ;;  %v481_v29 = vld [vmem:[%s1089_s2 + $0x60] sm:$0xff]  ;;  %v480_v30 = vld [vmem:[%s1089_s2 + $0x58] sm:$0xff] }
  0x16   : > { %384 = vperm.xlu2 %816, %v346_v4   ;;  %v484_v31 = vld [vmem:[%s1089_s2 + $0x78] sm:$0xff]  ;;  %v483_v32 = vld [vmem:[%s1089_s2 + $0x70] sm:$0xff]  ;;  %v294_v40 = vld [vmem:[%s991_s10 + $0x8] sm:$0xff] }
  0x17   : > { %374 = vperm.xlu1 %815, %v344_v5   ;;  %364 = vperm.xlu0 %814, %v342_v6   ;;  %v311_v43 = vunpack.c.l.bf16 %v294_v40  ;;  %v312_v44 = vunpack.c.h.bf16 %v294_v40  ;;  %v297_v47 = vld [vmem:[%s991_s10 + $0x20] sm:$0xff]  ;;  %v300_v57 = vld [vmem:[%s991_s10 + $0x38] sm:$0xff]  ;;  %v303_v3 = vld [vmem:[%s991_s10 + $0x50] sm:$0xff] }
  0x18   : > { %v317_v53 = vunpack.c.l.bf16 %v297_v47  ;;  %v318_v54 = vunpack.c.h.bf16 %v297_v47  ;;  %v323_v63 = vunpack.c.l.bf16 %v300_v57  ;;  %v324_v0 = vunpack.c.h.bf16 %v300_v57  ;;  %v293_v5 = vld [vmem:[%s991_s10] sm:$0xff]  ;;  %v299_v47 = vld [vmem:[%s991_s10 + $0x30] sm:$0xff] }
  0x19   : > { %v321_v57 = vunpack.c.l.bf16 %v299_v47 }
  0x1e   : > { %399 = vperm.xlu2 %816, %v349_v7  }
  0x1f   : > { %394 = vperm.xlu1 %815, %v348_v8   ;;  %389 = vperm.xlu0 %814, %v347_v9  }
  0x26   : > { %414 = vperm.xlu2 %816, %v352_v10   ;;  %v329_v10 = vunpack.c.l.bf16 %v303_v3 }
  0x27   : > { %409 = vperm.xlu1 %815, %v351_v11   ;;  %404 = vperm.xlu0 %814, %v350_v12   ;;  %v330_v11 = vunpack.c.h.bf16 %v303_v3  ;;  %v309_v12 = vunpack.c.l.bf16 %v293_v5 }
  0x2e   : > { %429 = vperm.xlu2 %816, %v355_v13   ;;  %v310_v13 = vunpack.c.h.bf16 %v293_v5 }
  0x2f   : > { %424 = vperm.xlu1 %815, %v354_v14   ;;  %419 = vperm.xlu0 %814, %v353_v15  }
  0x36   : > { %492 = vperm.xlu2 %816, %v470_v16  }
  0x37   : > { %487 = vperm.xlu1 %815, %v469_v17   ;;  %434 = vperm.xlu0 %814, %v356_v18   ;;  %v306_v18 = vld [vmem:[%s991_s10 + $0x68] sm:$0xff] }
  0x3e   : > { %507 = vperm.xlu2 %816, %v473_v19  }
  0x3f   : > { %502 = vperm.xlu1 %815, %v472_v20   ;;  %497 = vperm.xlu0 %814, %v471_v21   ;;  %v296_v20 = vld [vmem:[%s991_s10 + $0x18] sm:$0xff] }
  0x46   : > { %522 = vperm.xlu2 %816, %v476_v22  }
  0x47   : > { %517 = vperm.xlu1 %815, %v475_v23   ;;  %512 = vperm.xlu0 %814, %v474_v24  }
  0x4e   : > { %537 = vperm.xlu2 %816, %v479_v25   ;;  %v295_v25 = vld [vmem:[%s991_s10 + $0x10] sm:$0xff] }
  0x4f   : > { %532 = vperm.xlu1 %815, %v478_v26   ;;  %527 = vperm.xlu0 %814, %v477_v27  }
  0x56   : > { %552 = vperm.xlu2 %816, %v482_v28   ;;  %v335_v28 = vunpack.c.l.bf16 %v306_v18 }
  0x57   : > { %547 = vperm.xlu1 %815, %v481_v29   ;;  %542 = vperm.xlu0 %814, %v480_v30   ;;  %v336_v29 = vunpack.c.h.bf16 %v306_v18  ;;  %v315_v30 = vunpack.c.l.bf16 %v296_v20 }
  0x5f   : > { %562 = vperm.xlu1 %815, %v484_v31   ;;  %557 = vperm.xlu0 %814, %v483_v32   ;;  %v316_v31 = vunpack.c.h.bf16 %v296_v20  ;;  %v313_v32 = vunpack.c.l.bf16 %v295_v25 }
  0x68   : > { %v380_v33 = vpop.permute.xlu2 %379 }
  0x69   : > { %v445_v55 = vmul.f32 %v380_v33, %v317_v53  ;;  %v446_v56 = vmul.f32 %v380_v33, %v318_v54  ;;  %v314_v33 = vunpack.c.h.bf16 %v295_v25 }
  0x70   : > { %v978_v34 = vpop.permute.xlu2 %384 }
  0x78   : > { %v980_v35 = vpop.permute.xlu2 %399 }
  0x80   : > { %v984_v36 = vpop.permute.xlu2 %414 }
  0x81   : > { %v986_v37 = vpop.permute.xlu1 %369  ;;  %v360_v38 = vpop.permute.xlu0 %359 }
  0x82   : > { %v437_v16 = vmul.f32 %v360_v38, %v309_v12  ;;  %v438_v17 = vmul.f32 %v360_v38, %v310_v13  ;;  %v442_v53 = vmul.f32 %v986_v37, %v314_v33 }
  0x88   : > { %v993_v39 = vpop.permute.xlu2 %429 }
  0x89   : > { %v996_v41 = vpop.permute.xlu1 %374  ;;  %v365_v42 = vpop.permute.xlu0 %364 }
  0x8a   : > { %v439_v45 = vmul.f32 %v365_v42, %v311_v43  ;;  %v440_v46 = vmul.f32 %v365_v42, %v312_v44  ;;  %v443_v42 = vmul.f32 %v996_v41, %v315_v30  ;;  %v444_v43 = vmul.f32 %v996_v41, %v316_v31  ;;  %v307_v31 = vld [vmem:[%s991_s10 + $0x70] sm:$0xff] }
  0x90   : > { %v493_v48 = vpop.permute.xlu2 %492 }
  0x91   : > { %v567_v49 = vadd.f32 %v493_v48, %v439_v45  ;;  %v568_v50 = vadd.f32 %v493_v48, %v440_v46  ;;  %v395_v51 = vpop.permute.xlu1 %394  ;;  %v1004_v52 = vpop.permute.xlu0 %389  ;;  %v298_v45 = vld [vmem:[%s991_s10 + $0x28] sm:$0xff]  ;;  %v441_v46 = vmul.f32 %v986_v37, %v313_v32  ;;  %v308_v32 = vld [vmem:[%s991_s10 + $0x78] sm:$0xff] }
  0x92   : > { %v451_v1 = vmul.f32 %v395_v51, %v323_v63  ;;  %v452_v2 = vmul.f32 %v395_v51, %v324_v0  ;;  %v449_v37 = vmul.f32 %v1004_v52, %v321_v57 }
  0x93   : > { %599 = vst [vmem:[%s1001_s18 + $0x10] sm:$0xff] %v567_v49 }
  0x94   : > { %600 = vst [vmem:[%s1001_s18 + $0x18] sm:$0xff] %v568_v50 }
  0x98   : > { %v508_v58 = vpop.permute.xlu2 %507 }
  0x99   : > { %v573_v59 = vadd.f32 %v508_v58, %v445_v55  ;;  %v574_v60 = vadd.f32 %v508_v58, %v446_v56  ;;  %v410_v61 = vpop.permute.xlu1 %409  ;;  %v1009_v62 = vpop.permute.xlu0 %404  ;;  %v319_v56 = vunpack.c.l.bf16 %v298_v45  ;;  %v322_v58 = vunpack.c.h.bf16 %v299_v47 }
  0x9a   : > { %v457_v14 = vmul.f32 %v410_v61, %v329_v10  ;;  %v458_v15 = vmul.f32 %v410_v61, %v330_v11  ;;  %v340_v47 = vunpack.c.h.bf16 %v308_v32 }
  0x9b   : > { %605 = vst [vmem:[%s1001_s18 + $0x40] sm:$0xff] %v573_v59  ;;  %v447_v61 = vmul.f32 %v978_v34, %v319_v56  ;;  %v450_v63 = vmul.f32 %v1004_v52, %v322_v58 }
  0x9c   : > { %606 = vst [vmem:[%s1001_s18 + $0x48] sm:$0xff] %v574_v60  ;;  %v320_v60 = vunpack.c.h.bf16 %v298_v45  ;;  %v337_v45 = vunpack.c.l.bf16 %v307_v31 }
  0x9e   : > { %v448_v0 = vmul.f32 %v978_v34, %v320_v60 }
  0xa0   : > { %v523_v4 = vpop.permute.xlu2 %522 }
  0xa1   : > { %v579_v6 = vadd.f32 %v523_v4, %v451_v1  ;;  %v580_v7 = vadd.f32 %v523_v4, %v452_v2  ;;  %v425_v8 = vpop.permute.xlu1 %424  ;;  %v1015_v9 = vpop.permute.xlu0 %419  ;;  %v301_v1 = vld [vmem:[%s991_s10 + $0x40] sm:$0xff]  ;;  %v302_v2 = vld [vmem:[%s991_s10 + $0x48] sm:$0xff] }
  0xa2   : > { %v463_v38 = vmul.f32 %v425_v8, %v335_v28  ;;  %v464_v40 = vmul.f32 %v425_v8, %v336_v29  ;;  %v325_v10 = vunpack.c.l.bf16 %v301_v1  ;;  %v327_v11 = vunpack.c.l.bf16 %v302_v2 }
  0xa3   : > { %611 = vst [vmem:[%s1001_s18 + $0x70] sm:$0xff] %v579_v6  ;;  %v328_v12 = vunpack.c.h.bf16 %v302_v2  ;;  %v326_v52 = vunpack.c.h.bf16 %v301_v1 }
  0xa4   : > { %612 = vst [vmem:[%s1001_s18 + $0x78] sm:$0xff] %v580_v7  ;;  %v453_v34 = vmul.f32 %v980_v35, %v325_v10  ;;  %v455_v13 = vmul.f32 %v1009_v62, %v327_v11 }
  0xa8   : > { %v538_v19 = vpop.permute.xlu2 %537 }
  0xa9   : > { %v585_v21 = vadd.f32 %v538_v19, %v457_v14  ;;  %v586_v22 = vadd.f32 %v538_v19, %v458_v15  ;;  %v488_v23 = vpop.permute.xlu1 %487  ;;  %v1021_v24 = vpop.permute.xlu0 %434  ;;  %v456_v14 = vmul.f32 %v1009_v62, %v328_v12  ;;  %v454_v15 = vmul.f32 %v980_v35, %v326_v52 }
  0xaa   : > { %v565_v26 = vadd.f32 %v488_v23, %v437_v16  ;;  %v566_v27 = vadd.f32 %v488_v23, %v438_v17  ;;  %v304_v16 = vld [vmem:[%s991_s10 + $0x58] sm:$0xff]  ;;  %v305_v17 = vld [vmem:[%s991_s10 + $0x60] sm:$0xff] }
  0xab   : > { %617 = vst [vmem:[%s1001_s18 + $0xa0] sm:$0xff] %v585_v21  ;;  %v331_v25 = vunpack.c.l.bf16 %v304_v16  ;;  %v332_v28 = vunpack.c.h.bf16 %v304_v16 }
  0xac   : > { %618 = vst [vmem:[%s1001_s18 + $0xa8] sm:$0xff] %v586_v22 }
  0xad   : > { %597 = vst [vmem:[%s1001_s18] sm:$0xff] %v565_v26  ;;  %v333_v26 = vunpack.c.l.bf16 %v305_v17  ;;  %v459_v35 = vmul.f32 %v984_v36, %v331_v25  ;;  %v460_v30 = vmul.f32 %v984_v36, %v332_v28  ;;  %v465_v36 = vmul.f32 %v993_v39, %v337_v45 }
  0xae   : > { %598 = vst [vmem:[%s1001_s18 + $0x8] sm:$0xff] %v566_v27  ;;  %v334_v27 = vunpack.c.h.bf16 %v305_v17 }
  0xaf   : > { %v461_v62 = vmul.f32 %v1015_v9, %v333_v26 }
  0xb0   : > { %v553_v44 = vpop.permute.xlu2 %552  ;;  %v462_v29 = vmul.f32 %v1015_v9, %v334_v27 }
  0xb1   : > { %v591_v48 = vadd.f32 %v553_v44, %v463_v38  ;;  %v592_v49 = vadd.f32 %v553_v44, %v464_v40  ;;  %v503_v50 = vpop.permute.xlu1 %502  ;;  %v498_v51 = vpop.permute.xlu0 %497 }
  0xb2   : > { %v571_v54 = vadd.f32 %v503_v50, %v443_v42  ;;  %v572_v55 = vadd.f32 %v503_v50, %v444_v43  ;;  %v569_v41 = vadd.f32 %v498_v51, %v441_v46  ;;  %v570_v59 = vadd.f32 %v498_v51, %v442_v53 }
  0xb3   : > { %623 = vst [vmem:[%s1001_s18 + $0xd0] sm:$0xff] %v591_v48  ;;  %v339_v46 = vunpack.c.l.bf16 %v308_v32  ;;  %v338_v48 = vunpack.c.h.bf16 %v307_v31 }
  0xb4   : > { %624 = vst [vmem:[%s1001_s18 + $0xd8] sm:$0xff] %v592_v49  ;;  %v468_v49 = vmul.f32 %v1021_v24, %v340_v47 }
  0xb5   : > { %603 = vst [vmem:[%s1001_s18 + $0x30] sm:$0xff] %v571_v54  ;;  %v467_v9 = vmul.f32 %v1021_v24, %v339_v46  ;;  %v466_v50 = vmul.f32 %v993_v39, %v338_v48 }
  0xb6   : > { %604 = vst [vmem:[%s1001_s18 + $0x38] sm:$0xff] %v572_v55 }
  0xb7   : > { %601 = vst [vmem:[%s1001_s18 + $0x20] sm:$0xff] %v569_v41 }
  0xb8   : > { %602 = vst [vmem:[%s1001_s18 + $0x28] sm:$0xff] %v570_v59 }
  0xb9   : > { %v518_v3 = vpop.permute.xlu1 %517  ;;  %v513_v4 = vpop.permute.xlu0 %512 }
  0xba   : > { %v577_v5 = vadd.f32 %v518_v3, %v449_v37  ;;  %v578_v6 = vadd.f32 %v518_v3, %v450_v63  ;;  %v575_v7 = vadd.f32 %v513_v4, %v447_v61  ;;  %v576_v8 = vadd.f32 %v513_v4, %v448_v0 }
  0xbc   : > { %609 = vst [vmem:[%s1001_s18 + $0x60] sm:$0xff] %v577_v5 }
  0xbd   : > { %610 = vst [vmem:[%s1001_s18 + $0x68] sm:$0xff] %v578_v6 }
  0xbe   : > { %607 = vst [vmem:[%s1001_s18 + $0x50] sm:$0xff] %v575_v7 }
  0xbf   : > { %608 = vst [vmem:[%s1001_s18 + $0x58] sm:$0xff] %v576_v8 }
  0xc1   : > { %v533_v18 = vpop.permute.xlu1 %532  ;;  %v528_v19 = vpop.permute.xlu0 %527 }
  0xc2   : > { %v583_v20 = vadd.f32 %v533_v18, %v455_v13  ;;  %v584_v21 = vadd.f32 %v533_v18, %v456_v14  ;;  %v581_v22 = vadd.f32 %v528_v19, %v453_v34  ;;  %v582_v23 = vadd.f32 %v528_v19, %v454_v15 }
  0xc4   : > { %615 = vst [vmem:[%s1001_s18 + $0x90] sm:$0xff] %v583_v20 }
  0xc5   : > { %616 = vst [vmem:[%s1001_s18 + $0x98] sm:$0xff] %v584_v21 }
  0xc6   : > { %613 = vst [vmem:[%s1001_s18 + $0x80] sm:$0xff] %v581_v22 }
  0xc7   : > { %614 = vst [vmem:[%s1001_s18 + $0x88] sm:$0xff] %v582_v23 }
  0xc9   : > { %v548_v33 = vpop.permute.xlu1 %547  ;;  %v543_v38 = vpop.permute.xlu0 %542 }
  0xca   : > { %v589_v40 = vadd.f32 %v548_v33, %v461_v62  ;;  %v590_v42 = vadd.f32 %v548_v33, %v462_v29  ;;  %v587_v43 = vadd.f32 %v543_v38, %v459_v35  ;;  %v588_v44 = vadd.f32 %v543_v38, %v460_v30 }
  0xcc   : > { %621 = vst [vmem:[%s1001_s18 + $0xc0] sm:$0xff] %v589_v40 }
  0xcd   : > { %622 = vst [vmem:[%s1001_s18 + $0xc8] sm:$0xff] %v590_v42 }
  0xce   : > { %619 = vst [vmem:[%s1001_s18 + $0xb0] sm:$0xff] %v587_v43 }
  0xcf   : > { %620 = vst [vmem:[%s1001_s18 + $0xb8] sm:$0xff] %v588_v44 }
  0xd1   : > { %v563_v51 = vpop.permute.xlu1 %562  ;;  %v558_v53 = vpop.permute.xlu0 %557 }
  0xd2   : > { %v595_v54 = vadd.f32 %v563_v51, %v467_v9  ;;  %v596_v55 = vadd.f32 %v563_v51, %v468_v49  ;;  %v593_v41 = vadd.f32 %v558_v53, %v465_v36  ;;  %v594_v56 = vadd.f32 %v558_v53, %v466_v50 }
  0xd4   : > { %627 = vst [vmem:[%s1001_s18 + $0xf0] sm:$0xff] %v595_v54 }
  0xd5   : > { %628 = vst [vmem:[%s1001_s18 + $0xf8] sm:$0xff] %v596_v55 }
  0xd6   : > { %625 = vst [vmem:[%s1001_s18 + $0xe0] sm:$0xff] %v593_v41 }
  0xd7   : > { %626 = vst [vmem:[%s1001_s18 + $0xe8] sm:$0xff] %v594_v56 }
  0xd8 PF: > { %s13_s14 = sadd.s32 1, %s839_s14   ;;  %s1091_s12 = smov %s835_s13 }
  0xd9   : > { %p10_p5 = scmp.ge.s32.totalorder %s13_s14, 4   ;;  %s1092_s13 = smov %s1094_s15 }
  0xdb   :  { %12 = sbr.rel (!%p10_p5) target bundleno = 2 (0x2), region = 68 }

</bundles_post_ra>
